<compile_context>
chip_gen: v7x
topology: tpu7x:2x2x1
jax: 0.10.0
libtpu: 0.0.40
codegen_flags: <defaults>
</compile_context>

<pallas_src>
import functools

import jax
import jax.numpy as jnp
from jax.experimental import pallas as pl
from jax.experimental.pallas import tpu as pltpu


def _round_up(x: int, m: int) -> int:
    return (x + m - 1) // m * m


def _encoder_kernel(x_ref, w1_ref, b1_ref, wh_ref, bh_ref, out_ref):
    # One batch tile per grid step: two MXU matmuls + bias + ReLU, all in VMEM.
    x = x_ref[...]                                                    # (TB, D)
    h = jnp.dot(x, w1_ref[...], preferred_element_type=jnp.float32)  # (TB, Hp) f32
    h = jnp.maximum(h + b1_ref[...], 0.0)                            # bias + ReLU (f32)
    # Fused mu||logvar head: one lane-dense (TB, Np) matmul, f32 accumulation.
    y = jnp.dot(h.astype(wh_ref.dtype), wh_ref[...],
                preferred_element_type=jnp.float32)
    out_ref[...] = (y + bh_ref[...]).astype(out_ref.dtype)


def prepare_encoder_params(params, compute_dtype=jnp.bfloat16):
    """One-time weight prep (run ONCE, reuse across forward calls).

    Fuses the mu/logvar heads, zero-pads the hidden width to a multiple of 128
    lanes and the fused head width to a multiple of 128 lanes, and casts the
    matmul weights to the compute dtype (biases stay f32: they are added in f32).
    """
    w1, b1 = params["w1"], params["b1"]
    wmu, bmu = params["w_mu"], params["b_mu"]
    wlv, blv = params["w_logvar"], params["b_logvar"]

    D, Hd = w1.shape
    L = wmu.shape[1]
    Hp = max(_round_up(Hd, 128), 128)
    Np = max(_round_up(2 * L, 128), 128)

    w1_p = (jnp.zeros((D, Hp), compute_dtype)
            .at[:, :Hd].set(w1.astype(compute_dtype)))
    b1_p = (jnp.zeros((1, Hp), jnp.float32)
            .at[0, :Hd].set(b1.astype(jnp.float32)))
    # Padded hidden lanes are exactly 0 after ReLU, and the padded head rows
    # are 0 too, so padding never perturbs mu/logvar.
    wh_p = (jnp.zeros((Hp, Np), compute_dtype)
            .at[:Hd, :L].set(wmu.astype(compute_dtype))
            .at[:Hd, L:2 * L].set(wlv.astype(compute_dtype)))
    bh_p = (jnp.zeros((1, Np), jnp.float32)
            .at[0, :L].set(bmu.astype(jnp.float32))
            .at[0, L:2 * L].set(blv.astype(jnp.float32)))
    return {"w1": w1_p, "b1": b1_p, "w_head": wh_p, "b_head": bh_p}


@functools.partial(jax.jit, static_argnames=("latent_size", "tb_max"))
def encoder_forward(x, prep, *, latent_size, tb_max=1024):
    """x: (B, C, H, W) / (B, H, W) / (B, H*W); prep: prepare_encoder_params().

    Matches PyTorch `x.view(-1, W*H)` semantics (extra leading axes fold into
    the batch). Returns (mu, logvar) as float32 (B_total, latent_size).
    """
    w1, b1 = prep["w1"], prep["b1"]
    wh, bh = prep["w_head"], prep["b_head"]
    D, Hp = w1.shape
    Np = wh.shape[1]
    L = int(latent_size)

    compute_dtype = w1.dtype
    cbytes = jnp.dtype(compute_dtype).itemsize
    out_dtype = compute_dtype                 # lane-dense slab, cheap writeback
    obytes = jnp.dtype(out_dtype).itemsize

    # --- flatten to (B, D) rows, cast to compute dtype BEFORE padding --------
    x2d = x.reshape(-1, D).astype(compute_dtype)
    B = x2d.shape[0]

    # --- per-chip VMEM budget (v7x: 64 MiB, v5e/v6e: 128 MiB) ----------------
    try:
        vmem_cap = int(pltpu.get_tpu_info().vmem_capacity_bytes)
    except Exception:
        vmem_cap = 64 << 20                   # conservative fallback (v7x floor)
    budget = int(vmem_cap * 0.6)              # headroom for compiler scratch

    # Single-buffered resident weights + double-buffered streamed x / out tiles.
    weight_bytes = (D * Hp + Hp * Np) * cbytes + (Hp + Np) * 4
    per_row = 2 * D * cbytes + 2 * Np * obytes
    tb_fit = max((budget - weight_bytes) // max(per_row, 1), 8)
    # TODO(synk): if bf16 weights alone exceed the per-chip VMEM budget (very
    # large D*Hp), add a D-reduction grid axis ("arbitrary") with an f32 VMEM
    # accumulator so only (D_tile, Hp) weight slices are resident.

    # >= 2 grid steps whenever the batch allows, so the "parallel" axis can
    # shard across both v7x TensorCores.
    tb_split = _round_up(max((B + 1) // 2, 1), 8)
    TB = int(max(8, (min(int(tb_max), int(tb_fit), tb_split) // 8) * 8))

    B_pad = _round_up(B, TB)
    if B_pad != B:
        x2d = jnp.pad(x2d, ((0, B_pad - B), (0, 0)))
    grid = (B_pad // TB,)

    need = weight_bytes + TB * per_row
    vmem_limit = int(min(max(need + (4 << 20), 16 << 20), int(vmem_cap * 0.9)))

    out = pl.pallas_call(
        _encoder_kernel,
        out_shape=jax.ShapeDtypeStruct((B_pad, Np), out_dtype),
        grid=grid,
        in_specs=[
            # streamed x tiles (default double-buffered pipeline)
            pl.BlockSpec((TB, D), lambda i: (i, 0)),
            # pinned weights / biases: block index never changes -> 1 buffer
            pl.BlockSpec((D, Hp), lambda i: (0, 0), pipeline_mode=pl.Buffered(1)),
            pl.BlockSpec((1, Hp), lambda i: (0, 0), pipeline_mode=pl.Buffered(1)),
            pl.BlockSpec((Hp, Np), lambda i: (0, 0), pipeline_mode=pl.Buffered(1)),
            pl.BlockSpec((1, Np), lambda i: (0, 0), pipeline_mode=pl.Buffered(1)),
        ],
        out_specs=pl.BlockSpec((TB, Np), lambda i: (i, 0)),   # lane-dense output
        compiler_params=pltpu.CompilerParams(
            dimension_semantics=("parallel",),
            vmem_limit_bytes=vmem_limit),
    )(x2d, w1, b1, wh, bh)

    # Tiny slices; cast back to f32 to match the reference module's dtype.
    mu = out[:B, :L].astype(jnp.float32)
    logvar = out[:B, L:2 * L].astype(jnp.float32)
    return mu, logvar


def init_encoder_params(key, image_width, image_height, latent_size, hidden_size):
    """Deterministic init matching nn.Linear default (U[-1/sqrt(fan_in), +])."""
    D = image_width * image_height
    ks = jax.random.split(key, 6)

    def linear(kw, kb, fan_in, fan_out):
        bound = 1.0 / jnp.sqrt(fan_in)
        w = jax.random.uniform(kw, (fan_in, fan_out), jnp.float32, -bound, bound)
        b = jax.random.uniform(kb, (fan_out,), jnp.float32, -bound, bound)
        return w, b

    w1, b1 = linear(ks[0], ks[1], D, hidden_size)
    wmu, bmu = linear(ks[2], ks[3], hidden_size, latent_size)
    wlv, blv = linear(ks[4], ks[5], hidden_size, latent_size)
    return {"w1": w1, "b1": b1, "w_mu": wmu, "b_mu": bmu,
            "w_logvar": wlv, "b_logvar": blv}


if __name__ == "__main__":
    image_width = 16
    image_height = 16
    hidden_size = 32
    latent_size = 8
    batch = 2

    key = jax.random.PRNGKey(0)
    k_params, k_x = jax.random.split(key)
    params = init_encoder_params(k_params, image_width, image_height,
                                 latent_size, hidden_size)
    # NCHW input, matching PyTorch convention (C=1 folds into the batch like
    # the reference's x.view(-1, W*H)).
    x = jax.random.normal(k_x, (batch, 1, image_height, image_width), jnp.float32)

    # One-time weight prep (fusion / padding / bf16 cast), then the kernel.
    prep = prepare_encoder_params(params, compute_dtype=jnp.bfloat16)
    mu, logvar = encoder_forward(x, prep, latent_size=latent_size)
    jax.block_until_ready((mu, logvar))

    # Pure-JAX f32 reference; bf16 compute -> relaxed tolerance (expected).
    x2d = x.reshape(-1, image_width * image_height)
    h_ref = jnp.maximum(x2d @ params["w1"] + params["b1"], 0.0)
    mu_ref = h_ref @ params["w_mu"] + params["b_mu"]
    lv_ref = h_ref @ params["w_logvar"] + params["b_logvar"]

    assert mu.shape == (batch, latent_size) and logvar.shape == (batch, latent_size)
    assert jnp.allclose(mu, mu_ref, atol=3e-2, rtol=3e-2)
    assert jnp.allclose(logvar, lv_ref, atol=3e-2, rtol=3e-2)

    print("KERNEL_OK")
</pallas_src>

<mosaic_0001>
module attributes {stable_mosaic.version = 11 : i64} {
  func.func @_encoder_kernel(%arg0: i32, %arg1: memref<8x256xbf16, #tpu.memory_space<vmem>>, %arg2: memref<256x128xbf16, #tpu.memory_space<vmem>>, %arg3: memref<1x128xf32, #tpu.memory_space<vmem>>, %arg4: memref<128x128xbf16, #tpu.memory_space<vmem>>, %arg5: memref<1x128xf32, #tpu.memory_space<vmem>>, %arg6: memref<8x128xbf16, #tpu.memory_space<vmem>>) attributes {dimension_semantics = [#tpu.dimension_semantics<parallel>], iteration_bounds = array<i64: 1>, scalar_prefetch = 0 : i64, scratch_operands = 0 : i64, tpu.core_type = #tpu.core_type<tc>, window_params = [{transform_indices = @transform_0, window_bounds = array<i64: 8, 256>}, {pipeline_mode = #tpu.pipeline_mode<synchronous>, transform_indices = @transform_1, window_bounds = array<i64: 256, 128>}, {pipeline_mode = #tpu.pipeline_mode<synchronous>, transform_indices = @transform_2, window_bounds = array<i64: 1, 128>}, {pipeline_mode = #tpu.pipeline_mode<synchronous>, transform_indices = @transform_3, window_bounds = array<i64: 128, 128>}, {pipeline_mode = #tpu.pipeline_mode<synchronous>, transform_indices = @transform_4, window_bounds = array<i64: 1, 128>}, {transform_indices = @transform_5, window_bounds = array<i64: 8, 128>}]} {
    %c0 = arith.constant 0 : index
    %c0_0 = arith.constant 0 : index
    %0 = vector.load %arg1[%c0, %c0_0] : memref<8x256xbf16, #tpu.memory_space<vmem>>, vector<8x256xbf16>
    %c0_1 = arith.constant 0 : index
    %c0_2 = arith.constant 0 : index
    %1 = vector.load %arg2[%c0_1, %c0_2] : memref<256x128xbf16, #tpu.memory_space<vmem>>, vector<256x128xbf16>
    %cst = arith.constant dense<0.000000e+00> : vector<8x128xf32>
    %2 = tpu.matmul %0, %1, %cst {dimension_numbers = #tpu.dot_dimension_numbers<[1], [0], [0], [1], [0, 0, 1, 1], [], []>} : vector<8x256xbf16>, vector<256x128xbf16>, vector<8x128xf32> -> vector<8x128xf32>
    %c0_3 = arith.constant 0 : index
    %c0_4 = arith.constant 0 : index
    %3 = vector.load %arg3[%c0_3, %c0_4] : memref<1x128xf32, #tpu.memory_space<vmem>>, vector<1x128xf32>
    %4 = vector.broadcast %3 : vector<1x128xf32> to vector<8x128xf32>
    %5 = arith.addf %2, %4 : vector<8x128xf32>
    %cst_5 = arith.constant 0.000000e+00 : f32
    %6 = vector.broadcast %cst_5 : f32 to vector<8x128xf32>
    %7 = arith.maximumf %5, %6 : vector<8x128xf32>
    %8 = arith.truncf %7 : vector<8x128xf32> to vector<8x128xbf16>
    %c0_6 = arith.constant 0 : index
    %c0_7 = arith.constant 0 : index
    %9 = vector.load %arg4[%c0_6, %c0_7] : memref<128x128xbf16, #tpu.memory_space<vmem>>, vector<128x128xbf16>
    %cst_8 = arith.constant dense<0.000000e+00> : vector<8x128xf32>
    %10 = tpu.matmul %8, %9, %cst_8 {dimension_numbers = #tpu.dot_dimension_numbers<[1], [0], [0], [1], [0, 0, 1, 1], [], []>} : vector<8x128xbf16>, vector<128x128xbf16>, vector<8x128xf32> -> vector<8x128xf32>
    %c0_9 = arith.constant 0 : index
    %c0_10 = arith.constant 0 : index
    %11 = vector.load %arg5[%c0_9, %c0_10] : memref<1x128xf32, #tpu.memory_space<vmem>>, vector<1x128xf32>
    %12 = vector.broadcast %11 : vector<1x128xf32> to vector<8x128xf32>
    %13 = arith.addf %10, %12 : vector<8x128xf32>
    %14 = arith.truncf %13 : vector<8x128xf32> to vector<8x128xbf16>
    %c0_11 = arith.constant 0 : index
    %c0_12 = arith.constant 0 : index
    %15 = vector.load %arg6[%c0_11, %c0_12] : memref<8x128xbf16, #tpu.memory_space<vmem>>, vector<8x128xbf16>
    tpu.vector_store %arg6[%c0_11, %c0_12], %14 {strides = array<i32>} : memref<8x128xbf16, #tpu.memory_space<vmem>>, vector<8x128xbf16>,
    return
  }
  func.func @transform_0(%arg0: i32) -> (i32, i32) {
    %c0_i32 = arith.constant 0 : i32
    %c0_i32_0 = arith.constant 0 : i32
    return %arg0, %c0_i32 : i32, i32
  }
  func.func @transform_1(%arg0: i32) -> (i32, i32) {
    %c0_i32 = arith.constant 0 : i32
    %c0_i32_0 = arith.constant 0 : i32
    %c0_i32_1 = arith.constant 0 : i32
    return %c0_i32, %c0_i32_0 : i32, i32
  }
  func.func @transform_2(%arg0: i32) -> (i32, i32) {
    %c0_i32 = arith.constant 0 : i32
    %c0_i32_0 = arith.constant 0 : i32
    %c0_i32_1 = arith.constant 0 : i32
    return %c0_i32, %c0_i32_0 : i32, i32
  }
  func.func @transform_3(%arg0: i32) -> (i32, i32) {
    %c0_i32 = arith.constant 0 : i32
    %c0_i32_0 = arith.constant 0 : i32
    %c0_i32_1 = arith.constant 0 : i32
    return %c0_i32, %c0_i32_0 : i32, i32
  }
  func.func @transform_4(%arg0: i32) -> (i32, i32) {
    %c0_i32 = arith.constant 0 : i32
    %c0_i32_0 = arith.constant 0 : i32
    %c0_i32_1 = arith.constant 0 : i32
    return %c0_i32, %c0_i32_0 : i32, i32
  }
  func.func @transform_5(%arg0: i32) -> (i32, i32) {
    %c0_i32 = arith.constant 0 : i32
    %c0_i32_0 = arith.constant 0 : i32
    return %arg0, %c0_i32 : i32, i32
  }
}

</mosaic_0001>

<bundles_post_ra>
// kernel: encoder_forward.1
= control target key start
LH: loop header
LB: loop body
LE: loop exit
PB: predicated region body
PF: predicated region fallthrough
CT: control target
= control target key end

     0   :  { %10 = vsyncpa [#allocation3], 0  ;;  %s472_s18 = smov [#allocation2]   ;;  %s564_s0 = inlined_call_operand.vmem [shape: bf16[8,256], index: 0, kind: input, shape index: {}]   ;;  %s565_s1 = inlined_call_operand.hbm [shape: bf16[256,128], index: 1, kind: input, shape index: {}]   ;;  %s566_s2 = inlined_call_operand.vmem [shape: f32[1,128], index: 2, kind: input, shape index: {}]   ;;  %s567_s3 = inlined_call_operand.vmem [shape: bf16[128,128], index: 3, kind: input, shape index: {}]   ;;  %s568_s4 = inlined_call_operand.vmem [shape: f32[1,128], index: 4, kind: input, shape index: {}]   ;;  %s569_s5 = inlined_call_operand.vmem [shape: bf16[8,128], index: 5, kind: output, shape index: {}]  }
   0x1   :  { %s18_s19 = sshll.u32 %s472_s18, 4  ;;  %s448_s22 = scalar_lea.hbm %s565_s1, 2048  ;;  %s19_s19 = int_to_ptr.vmem [resolvable:$true] %s18_s19 }
   0x2   :  { %p449_p0 = scmp.ne.s32.totalorder %s565_s1, %s448_s22  ;;  %p452_p1 = scmp.lt.u32.totalorder %s448_s22, %s565_s1 }
   0x4   :  { %p454_p2 = pnand %p452_p1, %p449_p0 }
   0x6   :  { %457 = shalt.err (!%p454_p2)
}
   0x7   :  { %s458_s27 = scalar_lea.vmem %s19_s19, 2048  ;;  %p463_p4 = scmp.lt.s32.totalorder %s19_s19, %s19_s19 }
   0x8   :  { %p459_p3 = scmp.ne.s32.totalorder %s19_s19, %s458_s27  ;;  %p464_p5 = scmp.lt.s32.totalorder %s458_s27, %s458_s27 }
   0xa   :  { %p465_p6 = por %p464_p5, %p463_p4 }
   0xc   :  { %p466_p7 = pnand %p465_p6, %p459_p3 }
   0xe   :  { %469 = shalt.err (!%p466_p7)
}
   0xf   :  { %s473_s28 = smov 64   ;;  %s474_s29 = smov 4  }
  0x10   :  { %24 = dma.hbm_to_vmem [thread:$0]  %s565_s1, 2048, %s19_s19, [#allocation3], %s473_s28, %s473_s28, %s474_s29  }
  0x11   :  { %470 = dma.done.wait [#allocation3], 2048  }
  0x12   :  { %471 = vsyncadd [#allocation3], 4294965248  ;;  %v475_v0 = vmov 0.0   ;;  %v422_v1 = vld [vmem:[#allocation2 + $0x40] sm:$0xff]   ;;  %v424_v3 = vld [vmem:[#allocation2 + $0x48] sm:$0xff]   ;;  %vm476_vm0 = vmmov 0  }
  0x13   :  { %397 = vmatprep.subr.bf16.mxu1 %v475_v0  ;;  %v423_v2 = vld [vmem:[#allocation2] sm:$0xff]   ;;  %366 = vmatprep.subr.bf16.mxu0 %v422_v1  ;;  %v425_v4 = vld [vmem:[#allocation2 + $0x8] sm:$0xff]   ;;  %v426_v5 = vld [vmem:[#allocation2 + $0x50] sm:$0xff]  }
  0x14   :  { %367 = vmatpush3.bf16.msra.mxu0 %v423_v2  ;;  %v427_v6 = vld [vmem:[#allocation2 + $0x10] sm:$0xff]   ;;  %v428_v7 = vld [vmem:[#allocation2 + $0x58] sm:$0xff]   ;;  %v430_v9 = vld [vmem:[#allocation2 + $0x60] sm:$0xff]   ;;  %413 = vmatprep.mubr.msk.bf16.mxu1 %vm476_vm0, %v475_v0 }
  0x15   :  { %368 = vmatprep.subr.bf16.mxu0 %v424_v3  ;;  %v429_v8 = vld [vmem:[#allocation2 + $0x18] sm:$0xff]   ;;  %v431_v10 = vld [vmem:[#allocation2 + $0x20] sm:$0xff]   ;;  %v432_v11 = vld [vmem:[#allocation2 + $0x68] sm:$0xff]  }
  0x16   :  { %v35_v12 = vld [vmem:[%s564_s0] sm:$0xff]  ;;  %v433_v15 = vld [vmem:[#allocation2 + $0x28] sm:$0xff]   ;;  %v434_v16 = vld [vmem:[#allocation2 + $0x70] sm:$0xff]  }
  0x17   :  { %v340_v13 = vcombine.high %v35_v12, %v35_v12  ;;  %v440_v14 = vld [vmem:[%s567_s3] sm:$0xff]   ;;  %v441_v17 = vld [vmem:[%s567_s3 + $0x8] sm:$0xff]   ;;  %v435_v18 = vld [vmem:[#allocation2 + $0x30] sm:$0xff]   ;;  %v339_v23 = vcombine.low %v35_v12, %v35_v12 }
  0x18   :  { %369 = vmatpush3.bf16.msra.mxu0 %v425_v4  ;;  %398 = vmatpush3.bf16.msra.mxu1 %v440_v14  ;;  %v436_v19 = vld [vmem:[#allocation2 + $0x78] sm:$0xff]   ;;  %v442_v20 = vld [vmem:[%s567_s3 + $0x10] sm:$0xff]   ;;  %v444_v24 = vld [vmem:[%s567_s3 + $0x20] sm:$0xff]  }
  0x19   :  { %370 = vmatprep.subr.bf16.mxu0 %v426_v5  ;;  %210 = vmatprep.mubr.bf16.mxu0 %v340_v13  ;;  %v437_v21 = vld [vmem:[#allocation2 + $0x38] sm:$0xff]   ;;  %v445_v25 = vld [vmem:[%s567_s3 + $0x28] sm:$0xff]   ;;  %v446_v26 = vld [vmem:[%s567_s3 + $0x30] sm:$0xff]  }
  0x1a   :  { %399 = vmatprep.subr.bf16.mxu1 %v475_v0  ;;  %v443_v22 = vld [vmem:[%s567_s3 + $0x18] sm:$0xff]   ;;  %v338_v29 = vld [vmem:[%s566_s2] ss:$0 sm:$0xff] }
  0x1b   :  { %v447_v27 = vld [vmem:[%s567_s3 + $0x38] sm:$0xff]   ;;  %v357_v37 = vld [vmem:[%s568_s4] ss:$0 sm:$0xff] }
  0x1c   :  { %371 = vmatpush3.bf16.msra.mxu0 %v427_v6  ;;  %400 = vmatpush3.bf16.msra.mxu1 %v441_v17 }
  0x1d   :  { %372 = vmatprep.subr.bf16.mxu0 %v428_v7  ;;  %401 = vmatprep.subr.bf16.mxu1 %v475_v0 }
  0x20   :  { %373 = vmatpush3.bf16.msra.mxu0 %v429_v8  ;;  %402 = vmatpush3.bf16.msra.mxu1 %v442_v20 }
  0x21   :  { %374 = vmatprep.subr.bf16.mxu0 %v430_v9  ;;  %403 = vmatprep.subr.bf16.mxu1 %v475_v0 }
  0x24   :  { %375 = vmatpush3.bf16.msra.mxu0 %v431_v10  ;;  %404 = vmatpush3.bf16.msra.mxu1 %v443_v22 }
  0x25   :  { %376 = vmatprep.subr.bf16.mxu0 %v432_v11  ;;  %405 = vmatprep.subr.bf16.mxu1 %v475_v0 }
  0x28   :  { %377 = vmatpush3.bf16.msra.mxu0 %v433_v15  ;;  %406 = vmatpush3.bf16.msra.mxu1 %v444_v24 }
  0x29   :  { %378 = vmatprep.subr.bf16.mxu0 %v434_v16  ;;  %407 = vmatprep.subr.bf16.mxu1 %v475_v0 }
  0x2c   :  { %379 = vmatpush3.bf16.msra.mxu0 %v435_v18  ;;  %408 = vmatpush3.bf16.msra.mxu1 %v445_v25 }
  0x2d   :  { %380 = vmatprep.subr.bf16.mxu0 %v436_v19  ;;  %409 = vmatprep.subr.bf16.mxu1 %v475_v0 }
  0x30   :  { %381 = vmatpush3.bf16.msra.mxu0 %v437_v21  ;;  %410 = vmatpush3.bf16.msra.mxu1 %v446_v26 }
  0x31   :  { %411 = vmatprep.subr.bf16.mxu1 %v475_v0 }
  0x33   :  { %211 = vmatmul.mubr.bf16.vlgmr.msra.gmra.mrb[0].mxu0 %v339_v23 }
  0x34   :  { %412 = vmatpush3.bf16.msra.mxu1 %v447_v27 }
 0x106   :  { %v382_v28 = vpop.f32.mrb[0].mxu0 }
 0x107   :  { %v383_v30 = vpop.f32.mrb[1].mxu0 }
 0x108   :  { %v384_v31 = vadd.f32 %v383_v30, %v382_v28  ;;  %v385_v32 = vpop.f32.mrb[2].mxu0 }
 0x109   :  { %v386_v33 = vpop.f32.mrb[3].mxu0 }
 0x10a   :  { %v213_v34 = vadd.f32 %v384_v31, %v338_v29 }
 0x10c   :  { %v218_v35 = vmax.f32 %v213_v34, 0.0 }
 0x10e   :  { %v219_v36 = vpack.c.bf16 %v218_v35, %v218_v35 }
 0x110   :  { %414 = vmatmul.mubr.bf16.vlgmr.msra.gmra.mrb[0].mxu1 %v219_v36 }
 0x1e3   :  { %v325_v38 = vpop.f32.mrb[0].mxu1 }
 0x1e4   :  { %v326_v39 = vadd.f32 %v357_v37, %v325_v38  ;;  %v415_v40 = vpop.f32.mrb[1].mxu1 }
 0x1e5   :  { %v328_v41 = vpop.f32.mrb[2].mxu1 }
 0x1e6   :  { %v331_v42 = vpack.c.bf16 %v326_v39, %v326_v39  ;;  %v416_v43 = vpop.f32.mrb[3].mxu1 }
 0x1e8   :  { %332 = vst [vmem:[%s569_s5] sm:$0xf] %v331_v42 }
 0x1e9   :  { %337 = vsyncpa [#allocation3], 1 }

</bundles_post_ra>
